<compile_context>
chip_gen: v7x
topology: tpu7x:2x2x1
jax: 0.10.0
libtpu: 0.0.40
codegen_flags: <defaults>
</compile_context>

<pallas_src>
import jax
import jax.numpy as jnp
from jax.experimental import pallas as pl
from jax.experimental.pallas import tpu as pltpu


def _sum11(x):
    """Sum of a (tb, H, W) array, returned as a (1, 1) array."""
    s = jnp.sum(x, axis=0)                      # (H, W)
    s = jnp.sum(s, axis=0, keepdims=True)       # (1, W)
    s = jnp.sum(s, axis=1, keepdims=True)       # (1, 1)
    return s


def _min11(x):
    m = jnp.min(x, axis=0)
    m = jnp.min(m, axis=0, keepdims=True)
    m = jnp.min(m, axis=1, keepdims=True)
    return m


def _max11(x):
    m = jnp.max(x, axis=0)
    m = jnp.max(m, axis=0, keepdims=True)
    m = jnp.max(m, axis=1, keepdims=True)
    return m


def _edge_bce_kernel(pred_ref, tgt_ref, top_ref, bot_ref, out_ref):
    """One (batch, H) tile: emit (sum_bce, sum_emag_bce, min_emag, max_emag) partials.

    pred_ref: (tile_b, tile_h, W)  channel-1 logits (channel picked by BlockSpec)
    tgt_ref:  (tile_b, tile_h, W)  binary mask (any dtype, cast to f32 here)
    top_ref:  (tile_b, 8, W)       8-row slab just above the tile (row 7 = halo row)
    bot_ref:  (tile_b, 8, W)       8-row slab just below the tile (row 0 = halo row)
    out_ref:  (8, 128)             partial stats in row 0, lanes 0..3
    """
    h_idx = pl.program_id(1)
    n_h = pl.num_programs(1)

    x = pred_ref[...].astype(jnp.float32)
    t = tgt_ref[...].astype(jnp.float32)
    tb, th, W = t.shape

    # Halo rows: only valid when a neighbouring H-tile exists, else implicit zero pad.
    zero_row = jnp.zeros((tb, 1, W), jnp.float32)
    row_above = jnp.where(h_idx > 0, top_ref[:, 7:8, :].astype(jnp.float32), zero_row)
    row_below = jnp.where(h_idx < n_h - 1, bot_ref[:, 0:1, :].astype(jnp.float32),
                          zero_row)

    # --- BCE via log-sigmoid identities (1 exp + 1 log1p per element) -----------
    #   log(sigmoid(x))     = min(x, 0) - log1p(exp(-|x|))
    #   log(1 - sigmoid(x)) = -max(x, 0) - log1p(exp(-|x|))
    # Clamp at -100 to match torch.F.binary_cross_entropy (soft-label safe form).
    sp = jnp.log1p(jnp.exp(-jnp.abs(x)))
    log_p = jnp.maximum(jnp.minimum(x, 0.0) - sp, -100.0)
    log_1mp = jnp.maximum(-jnp.maximum(x, 0.0) - sp, -100.0)
    bce = -(t * log_p + (1.0 - t) * log_1mp)

    # --- separable 3x3 Sobel via XLU rolls + boundary selects (no concat temps) --
    ri = jax.lax.broadcasted_iota(jnp.int32, (th, W), 0)
    ci = jax.lax.broadcasted_iota(jnp.int32, (th, W), 1)
    first_row = ri == 0
    last_row = ri == th - 1
    first_col = ci == 0
    last_col = ci == W - 1

    # t_up[i] = t[i-1] (halo/zero at tile top), t_dn[i] = t[i+1] (halo/zero at bottom)
    t_up = jnp.where(first_row, row_above, pltpu.roll(t, 1, axis=1))
    t_dn = jnp.where(last_row, row_below, pltpu.roll(t, th - 1, axis=1))

    s = t_up + 2.0 * t + t_dn          # vertical smoothing  (for edge_x)
    d = t_dn - t_up                    # vertical difference (for edge_y)

    def shift_left(a):                 # a[i, j-1], zero at j == 0
        return jnp.where(first_col, 0.0, pltpu.roll(a, 1, axis=2))

    def shift_right(a):                # a[i, j+1], zero at j == W-1
        return jnp.where(last_col, 0.0, pltpu.roll(a, W - 1, axis=2))

    edge_x = shift_right(s) - shift_left(s)
    edge_y = shift_left(d) + 2.0 * d + shift_right(d)
    emag = jnp.sqrt(edge_x * edge_x + edge_y * edge_y)

    # --- per-tile partial reductions ---------------------------------------------
    sum_bce = _sum11(bce)
    sum_wb = _sum11(emag * bce)
    emin = _min11(emag)
    emax = _max11(emag)

    # Pack the 4 scalars into row 0, lanes 0..3 of one unmasked (8, 128) store.
    r = jax.lax.broadcasted_iota(jnp.int32, (8, 128), 0)
    c = jax.lax.broadcasted_iota(jnp.int32, (8, 128), 1)
    blk = jnp.zeros((8, 128), jnp.float32)
    blk = jnp.where((r == 0) & (c == 0), sum_bce, blk)
    blk = jnp.where((r == 0) & (c == 1), sum_wb, blk)
    blk = jnp.where((r == 0) & (c == 2), emin, blk)
    blk = jnp.where((r == 0) & (c == 3), emax, blk)
    out_ref[...] = blk


def _vmem_params():
    """Generation-aware (block budget bytes, vmem_limit_bytes)."""
    try:
        vmem_cap = int(pltpu.get_tpu_info().vmem_capacity_bytes)
    except Exception:
        vmem_cap = 64 << 20            # conservative: assume v7x-sized VMEM
    if vmem_cap >= 100 << 20:          # v5e / v6e: 128 MiB per TensorCore
        return 4 << 20, 96 << 20
    else:                              # v7x: 64 MiB per TensorCore
        return 2 << 20, 48 << 20


def _auto_tiles(B, H, W, budget):
    """Pick (tile_b, tile_h): biggest blocks within `budget`, >= 2 grid steps when possible."""
    def divisors(n):
        return [d for d in range(1, n + 1) if n % d == 0]

    def block_bytes(tb, th):
        return tb * th * W * 4        # f32 pred block dominates

    b_fit = [d for d in divisors(B) if block_bytes(d, H) <= budget]
    if b_fit:
        pref = [d for d in b_fit if B // d >= 2]
        tile_b = max(pref) if (B >= 2 and pref) else max(b_fit)
        tile_h = H
        if B // tile_b == 1:
            # Single batch tile (B == 1): split H too so the parallel grid has >= 2
            # steps (megacore on v7x) and DMA/compute pipelining kicks in.
            h_fit = [d for d in divisors(H)
                     if d % 8 == 0 and d < H and block_bytes(tile_b, d) <= budget]
            if h_fit:
                tile_h = max(h_fit)
        return tile_b, tile_h

    # Even a single full-H image block blows the budget -> must H-tile (v7x guard).
    tile_b = 1
    h_fit = [d for d in divisors(H) if d % 8 == 0 and block_bytes(1, d) <= budget]
    if h_fit:
        return tile_b, max(h_fit)
    # TODO(synk): pad H to a multiple of 8 (or raise) when no clean H tiling exists;
    # falling back to a whole-image block may spill on v7x.
    return tile_b, H


def edge_sensitive_bce_loss(pred, target, lambda_edge=1.0, tile_b=None, tile_h=None):
    """pred: (B, C, H, W) logits (NCHW), target: (B, H, W) binary mask."""
    B, C, H, W = pred.shape
    assert target.shape == (B, H, W)
    assert C >= 2

    if target.dtype == jnp.bool_:
        target = target.astype(jnp.int8)   # keep the HBM read small; cast in-kernel

    budget, vmem_limit = _vmem_params()
    if tile_b is None or tile_h is None:
        auto_b, auto_h = _auto_tiles(B, H, W, budget)
        if tile_b is None:
            tile_b = auto_b
        if tile_h is None:
            tile_h = auto_h
    assert B % tile_b == 0, "tile_b must divide the batch size"
    assert H % tile_h == 0, "tile_h must divide H"
    num_b = B // tile_b
    num_h = H // tile_h
    if num_h > 1:
        assert tile_h % 8 == 0, "H-tiling requires tile_h to be a multiple of 8"

    if num_h > 1:
        # Halo rows come from the target itself: an 8-row slab just above / below the
        # tile (block index clamped at the image edges; unused values are masked off
        # in-kernel via program_id checks).  Extra traffic ~= 16/tile_h of the target.
        hb = tile_h // 8
        nhb = H // 8
        halo_src = target
        top_map = lambda b, h: (b, jnp.maximum(h * hb - 1, 0), 0)
        bot_map = lambda b, h: (b, jnp.minimum((h + 1) * hb, nhb - 1), 0)
        halo_block_b = tile_b
    else:
        # No H tiling: the halo is never used; feed a tiny dummy block.
        halo_src = jnp.zeros((tile_b, 8, W), jnp.float32)
        top_map = lambda b, h: (0, 0, 0)
        bot_map = lambda b, h: (0, 0, 0)
        halo_block_b = tile_b

    partials = pl.pallas_call(
        _edge_bce_kernel,
        out_shape=jax.ShapeDtypeStruct((num_b * num_h * 8, 128), jnp.float32),
        grid=(num_b, num_h),
        in_specs=[
            # Channel 1 selected here: only B*H*W*4 bytes of pred are ever read.
            pl.BlockSpec((tile_b, None, tile_h, W), lambda b, h: (b, 1, h, 0)),
            pl.BlockSpec((tile_b, tile_h, W), lambda b, h: (b, h, 0)),
            pl.BlockSpec((halo_block_b, 8, W), top_map),
            pl.BlockSpec((halo_block_b, 8, W), bot_map),
        ],
        out_specs=pl.BlockSpec((8, 128), lambda b, h: (b * num_h + h, 0)),
        compiler_params=pltpu.CompilerParams(
            dimension_semantics=("parallel", "parallel"),
            vmem_limit_bytes=int(vmem_limit),
        ),
    )(pred, target, halo_src, halo_src)

    # Tiny epilogue: combine per-tile partials and apply the algebraic min/max
    # normalization (a few scalar flops on a 4-KiB/tile array).
    stats = partials.reshape(num_b * num_h, 8, 128)[:, 0, :4]   # (tiles, 4)
    s_bce = jnp.sum(stats[:, 0])
    s_wb = jnp.sum(stats[:, 1])
    emin = jnp.min(stats[:, 2])
    emax = jnp.max(stats[:, 3])

    n = jnp.float32(B * H * W)
    denom = emax - emin + jnp.float32(1e-8)
    edge_sum = (s_wb - emin * s_bce) / denom       # == sum(edge_weight * bce)
    total = (s_bce + jnp.float32(lambda_edge) * edge_sum) / n
    return total


def _reference_loss(pred, target, lambda_edge=1.0):
    """Pure-JAX reference mirroring the PyTorch module."""
    p = jax.nn.sigmoid(pred[:, 1, :, :].astype(jnp.float32))
    t = target.astype(jnp.float32)
    bce = -(t * jnp.maximum(jnp.log(p), -100.0)
            + (1.0 - t) * jnp.maximum(jnp.log(1.0 - p), -100.0))

    sobel_x = jnp.array([[-1, 0, 1], [-2, 0, 2], [-1, 0, 1]], jnp.float32)
    sobel_y = jnp.array([[-1, -2, -1], [0, 0, 0], [1, 2, 1]], jnp.float32)
    tpad = jnp.pad(t, ((0, 0), (1, 1), (1, 1)))
    B, H, W = t.shape

    def corr(w):
        acc = jnp.zeros_like(t)
        for di in range(3):
            for dj in range(3):
                acc = acc + w[di, dj] * tpad[:, di:di + H, dj:dj + W]
        return acc

    emag = jnp.sqrt(corr(sobel_x) ** 2 + corr(sobel_y) ** 2)
    ew = (emag - emag.min()) / (emag.max() - emag.min() + 1e-8)
    return bce.mean() + lambda_edge * (ew * bce).mean()


if __name__ == "__main__":
    key = jax.random.PRNGKey(0)
    k1, k2 = jax.random.split(key)

    B, C, H, W = 2, 4, 16, 16
    pred = jax.random.normal(k1, (B, C, H, W), dtype=jnp.float32)
    target = (jax.random.uniform(k2, (B, H, W)) > 0.5).astype(jnp.float32)

    ref = _reference_loss(pred, target, lambda_edge=1.0)

    # 1) H-tiled path with 1-row halo (grid (2, 2)): exercises halo correctness.
    loss_h = edge_sensitive_bce_loss(pred, target, lambda_edge=1.0, tile_b=1, tile_h=8)
    jax.block_until_ready(loss_h)
    assert jnp.abs(loss_h - ref) < 1e-4, (loss_h, ref)

    # 2) Batch-only tiling (grid (2, 1)): no H tiling, dummy halo.
    loss_b = edge_sensitive_bce_loss(pred, target, lambda_edge=1.0, tile_b=1, tile_h=16)
    jax.block_until_ready(loss_b)
    assert jnp.abs(loss_b - ref) < 1e-4, (loss_b, ref)

    # 3) Default auto tiling (generation-aware budgets).
    loss = edge_sensitive_bce_loss(pred, target, lambda_edge=1.0)
    jax.block_until_ready(loss)
    assert jnp.abs(loss - ref) < 1e-4, (loss, ref)

    print("KERNEL_OK")
</pallas_src>

<mosaic_0001>
module attributes {stable_mosaic.version = 11 : i64} {
  func.func @_edge_bce_kernel(%arg0: i32, %arg1: i32, %arg2: memref<1x1x8x16xf32, #tpu.memory_space<vmem>>, %arg3: memref<1x8x16xf32, #tpu.memory_space<vmem>>, %arg4: memref<1x8x16xf32, #tpu.memory_space<vmem>>, %arg5: memref<1x8x16xf32, #tpu.memory_space<vmem>>, %arg6: memref<8x128xf32, #tpu.memory_space<vmem>>) attributes {dimension_semantics = [#tpu.dimension_semantics<parallel>, #tpu.dimension_semantics<parallel>], iteration_bounds = array<i64: 2, 2>, scalar_prefetch = 0 : i64, scratch_operands = 0 : i64, tpu.core_type = #tpu.core_type<tc>, window_params = [{transform_indices = @transform_0, window_bounds = array<i64: 1, 1, 8, 16>}, {transform_indices = @transform_1, window_bounds = array<i64: 1, 8, 16>}, {transform_indices = @transform_2, window_bounds = array<i64: 1, 8, 16>}, {transform_indices = @transform_3, window_bounds = array<i64: 1, 8, 16>}, {transform_indices = @transform_4, window_bounds = array<i64: 8, 128>}]} {
    %c0 = arith.constant 0 : index
    %c0_0 = arith.constant 0 : index
    %c0_1 = arith.constant 0 : index
    %c0_2 = arith.constant 0 : index
    %0 = vector.load %arg2[%c0, %c0_0, %c0_1, %c0_2] : memref<1x1x8x16xf32, #tpu.memory_space<vmem>>, vector<1x1x8x16xf32>
    %1 = vector.shape_cast %0 : vector<1x1x8x16xf32> to vector<1x8x16xf32>
    %c0_3 = arith.constant 0 : index
    %c0_4 = arith.constant 0 : index
    %c0_5 = arith.constant 0 : index
    %2 = vector.load %arg3[%c0_3, %c0_4, %c0_5] : memref<1x8x16xf32, #tpu.memory_space<vmem>>, vector<1x8x16xf32>
    %cst = arith.constant 0.000000e+00 : f32
    %3 = vector.broadcast %cst : f32 to vector<1x1x16xf32>
    %c0_i32 = arith.constant 0 : i32
    %4 = arith.cmpi sgt, %arg1, %c0_i32 : i32
    %c0_6 = arith.constant 0 : index
    %c7 = arith.constant 7 : index
    %c0_7 = arith.constant 0 : index
    %5 = vector.load %arg4[%c0_6, %c7, %c0_7] : memref<1x8x16xf32, #tpu.memory_space<vmem>>, vector<1x1x16xf32>
    %6 = arith.select %4, %5, %3 : vector<1x1x16xf32>
    %c1_i32 = arith.constant 1 : i32
    %7 = arith.cmpi slt, %arg1, %c1_i32 : i32
    %c0_8 = arith.constant 0 : index
    %c0_9 = arith.constant 0 : index
    %c0_10 = arith.constant 0 : index
    %8 = vector.load %arg5[%c0_8, %c0_9, %c0_10] : memref<1x8x16xf32, #tpu.memory_space<vmem>>, vector<1x1x16xf32>
    %9 = arith.select %7, %8, %3 : vector<1x1x16xf32>
    %10 = math.absf %1 : vector<1x8x16xf32>
    %cst_11 = arith.constant 0.000000e+00 : f32
    %11 = vector.broadcast %cst_11 : f32 to vector<1x8x16xf32>
    %12 = arith.subf %11, %10 : vector<1x8x16xf32>
    %13 = math.exp %12 : vector<1x8x16xf32>
    %14 = math.log1p %13 : vector<1x8x16xf32>
    %cst_12 = arith.constant 0.000000e+00 : f32
    %15 = vector.broadcast %cst_12 : f32 to vector<1x8x16xf32>
    %16 = arith.minimumf %1, %15 : vector<1x8x16xf32>
    %17 = arith.subf %16, %14 : vector<1x8x16xf32>
    %cst_13 = arith.constant -1.000000e+02 : f32
    %18 = vector.broadcast %cst_13 : f32 to vector<1x8x16xf32>
    %19 = arith.maximumf %17, %18 : vector<1x8x16xf32>
    %cst_14 = arith.constant 0.000000e+00 : f32
    %20 = vector.broadcast %cst_14 : f32 to vector<1x8x16xf32>
    %21 = arith.maximumf %1, %20 : vector<1x8x16xf32>
    %cst_15 = arith.constant 0.000000e+00 : f32
    %22 = vector.broadcast %cst_15 : f32 to vector<1x8x16xf32>
    %23 = arith.subf %22, %21 : vector<1x8x16xf32>
    %24 = arith.subf %23, %14 : vector<1x8x16xf32>
    %cst_16 = arith.constant -1.000000e+02 : f32
    %25 = vector.broadcast %cst_16 : f32 to vector<1x8x16xf32>
    %26 = arith.maximumf %24, %25 : vector<1x8x16xf32>
    %27 = arith.mulf %2, %19 : vector<1x8x16xf32>
    %cst_17 = arith.constant 1.000000e+00 : f32
    %28 = vector.broadcast %cst_17 : f32 to vector<1x8x16xf32>
    %29 = arith.subf %28, %2 : vector<1x8x16xf32>
    %30 = arith.mulf %29, %26 : vector<1x8x16xf32>
    %31 = arith.addf %27, %30 : vector<1x8x16xf32>
    %cst_18 = arith.constant 0.000000e+00 : f32
    %32 = vector.broadcast %cst_18 : f32 to vector<1x8x16xf32>
    %33 = arith.subf %32, %31 : vector<1x8x16xf32>
    %34 = tpu.iota {dimensions = array<i32: 0>} : vector<8x16xi32>
    %35 = tpu.iota {dimensions = array<i32: 1>} : vector<8x16xi32>
    %c0_i32_19 = arith.constant 0 : i32
    %36 = vector.broadcast %c0_i32_19 : i32 to vector<8x16xi32>
    %37 = arith.cmpi eq, %34, %36 : vector<8x16xi32>
    %c7_i32 = arith.constant 7 : i32
    %38 = vector.broadcast %c7_i32 : i32 to vector<8x16xi32>
    %39 = arith.cmpi eq, %34, %38 : vector<8x16xi32>
    %c0_i32_20 = arith.constant 0 : i32
    %40 = vector.broadcast %c0_i32_20 : i32 to vector<8x16xi32>
    %41 = arith.cmpi eq, %35, %40 : vector<8x16xi32>
    %c15_i32 = arith.constant 15 : i32
    %42 = vector.broadcast %c15_i32 : i32 to vector<8x16xi32>
    %43 = arith.cmpi eq, %35, %42 : vector<8x16xi32>
    %c1_i32_21 = arith.constant 1 : i32
    %44 = tpu.dynamic_rotate %2 by %c1_i32_21 dim 1 : vector<1x8x16xf32>, i32 -> vector<1x8x16xf32>
    %45 = vector.shape_cast %37 : vector<8x16xi1> to vector<1x8x16xi1>
    %46 = vector.shape_cast %6 : vector<1x1x16xf32> to vector<1x1x16xf32>
    %47 = vector.broadcast %46 : vector<1x1x16xf32> to vector<1x8x16xf32>
    %48 = arith.select %45, %47, %44 : vector<1x8x16xi1>, vector<1x8x16xf32>
    %c7_i32_22 = arith.constant 7 : i32
    %49 = tpu.dynamic_rotate %2 by %c7_i32_22 dim 1 : vector<1x8x16xf32>, i32 -> vector<1x8x16xf32>
    %50 = vector.shape_cast %39 : vector<8x16xi1> to vector<1x8x16xi1>
    %51 = vector.shape_cast %9 : vector<1x1x16xf32> to vector<1x1x16xf32>
    %52 = vector.broadcast %51 : vector<1x1x16xf32> to vector<1x8x16xf32>
    %53 = arith.select %50, %52, %49 : vector<1x8x16xi1>, vector<1x8x16xf32>
    %cst_23 = arith.constant 2.000000e+00 : f32
    %54 = vector.broadcast %cst_23 : f32 to vector<1x8x16xf32>
    %55 = arith.mulf %54, %2 : vector<1x8x16xf32>
    %56 = arith.addf %48, %55 : vector<1x8x16xf32>
    %57 = arith.addf %56, %53 : vector<1x8x16xf32>
    %58 = arith.subf %53, %48 : vector<1x8x16xf32>
    %c15_i32_24 = arith.constant 15 : i32
    %59 = tpu.dynamic_rotate %57 by %c15_i32_24 dim 2 : vector<1x8x16xf32>, i32 -> vector<1x8x16xf32>
    %cst_25 = arith.constant 0.000000e+00 : f32
    %60 = vector.shape_cast %43 : vector<8x16xi1> to vector<1x8x16xi1>
    %61 = vector.broadcast %cst_25 : f32 to vector<1x8x16xf32>
    %62 = arith.select %60, %61, %59 : vector<1x8x16xi1>, vector<1x8x16xf32>
    %c1_i32_26 = arith.constant 1 : i32
    %63 = tpu.dynamic_rotate %57 by %c1_i32_26 dim 2 : vector<1x8x16xf32>, i32 -> vector<1x8x16xf32>
    %cst_27 = arith.constant 0.000000e+00 : f32
    %64 = vector.shape_cast %41 : vector<8x16xi1> to vector<1x8x16xi1>
    %65 = vector.broadcast %cst_27 : f32 to vector<1x8x16xf32>
    %66 = arith.select %64, %65, %63 : vector<1x8x16xi1>, vector<1x8x16xf32>
    %67 = arith.subf %62, %66 : vector<1x8x16xf32>
    %c1_i32_28 = arith.constant 1 : i32
    %68 = tpu.dynamic_rotate %58 by %c1_i32_28 dim 2 : vector<1x8x16xf32>, i32 -> vector<1x8x16xf32>
    %cst_29 = arith.constant 0.000000e+00 : f32
    %69 = vector.shape_cast %41 : vector<8x16xi1> to vector<1x8x16xi1>
    %70 = vector.broadcast %cst_29 : f32 to vector<1x8x16xf32>
    %71 = arith.select %69, %70, %68 : vector<1x8x16xi1>, vector<1x8x16xf32>
    %cst_30 = arith.constant 2.000000e+00 : f32
    %72 = vector.broadcast %cst_30 : f32 to vector<1x8x16xf32>
    %73 = arith.mulf %72, %58 : vector<1x8x16xf32>
    %74 = arith.addf %71, %73 : vector<1x8x16xf32>
    %c15_i32_31 = arith.constant 15 : i32
    %75 = tpu.dynamic_rotate %58 by %c15_i32_31 dim 2 : vector<1x8x16xf32>, i32 -> vector<1x8x16xf32>
    %cst_32 = arith.constant 0.000000e+00 : f32
    %76 = vector.shape_cast %43 : vector<8x16xi1> to vector<1x8x16xi1>
    %77 = vector.broadcast %cst_32 : f32 to vector<1x8x16xf32>
    %78 = arith.select %76, %77, %75 : vector<1x8x16xi1>, vector<1x8x16xf32>
    %79 = arith.addf %74, %78 : vector<1x8x16xf32>
    %80 = arith.mulf %67, %67 : vector<1x8x16xf32>
    %81 = arith.mulf %79, %79 : vector<1x8x16xf32>
    %82 = arith.addf %80, %81 : vector<1x8x16xf32>
    %83 = math.sqrt %82 : vector<1x8x16xf32>
    %cst_33 = arith.constant dense<0.000000e+00> : vector<8x16xf32>
    %84 = vector.multi_reduction <add>, %33, %cst_33 [0] : vector<1x8x16xf32> to vector<8x16xf32>
    %cst_34 = arith.constant dense<0.000000e+00> : vector<16xf32>
    %85 = vector.multi_reduction <add>, %84, %cst_34 [0] : vector<8x16xf32> to vector<16xf32>
    %86 = vector.shape_cast %85 : vector<16xf32> to vector<1x16xf32>
    %cst_35 = arith.constant dense<0.000000e+00> : vector<1xf32>
    %87 = vector.multi_reduction <add>, %86, %cst_35 [1] : vector<1x16xf32> to vector<1xf32>
    %88 = vector.shape_cast %87 : vector<1xf32> to vector<1x1xf32>
    %89 = arith.mulf %83, %33 : vector<1x8x16xf32>
    %cst_36 = arith.constant dense<0.000000e+00> : vector<8x16xf32>
    %90 = vector.multi_reduction <add>, %89, %cst_36 [0] : vector<1x8x16xf32> to vector<8x16xf32>
    %cst_37 = arith.constant dense<0.000000e+00> : vector<16xf32>
    %91 = vector.multi_reduction <add>, %90, %cst_37 [0] : vector<8x16xf32> to vector<16xf32>
    %92 = vector.shape_cast %91 : vector<16xf32> to vector<1x16xf32>
    %cst_38 = arith.constant dense<0.000000e+00> : vector<1xf32>
    %93 = vector.multi_reduction <add>, %92, %cst_38 [1] : vector<1x16xf32> to vector<1xf32>
    %94 = vector.shape_cast %93 : vector<1xf32> to vector<1x1xf32>
    %cst_39 = arith.constant dense<0x7F800000> : vector<8x16xf32>
    %95 = vector.multi_reduction <minimumf>, %83, %cst_39 [0] : vector<1x8x16xf32> to vector<8x16xf32>
    %cst_40 = arith.constant dense<0x7F800000> : vector<16xf32>
    %96 = vector.multi_reduction <minimumf>, %95, %cst_40 [0] : vector<8x16xf32> to vector<16xf32>
    %97 = vector.shape_cast %96 : vector<16xf32> to vector<1x16xf32>
    %cst_41 = arith.constant dense<0x7F800000> : vector<1xf32>
    %98 = vector.multi_reduction <minimumf>, %97, %cst_41 [1] : vector<1x16xf32> to vector<1xf32>
    %99 = vector.shape_cast %98 : vector<1xf32> to vector<1x1xf32>
    %cst_42 = arith.constant dense<0xFF800000> : vector<8x16xf32>
    %100 = vector.multi_reduction <maximumf>, %83, %cst_42 [0] : vector<1x8x16xf32> to vector<8x16xf32>
    %cst_43 = arith.constant dense<0xFF800000> : vector<16xf32>
    %101 = vector.multi_reduction <maximumf>, %100, %cst_43 [0] : vector<8x16xf32> to vector<16xf32>
    %102 = vector.shape_cast %101 : vector<16xf32> to vector<1x16xf32>
    %cst_44 = arith.constant dense<0xFF800000> : vector<1xf32>
    %103 = vector.multi_reduction <maximumf>, %102, %cst_44 [1] : vector<1x16xf32> to vector<1xf32>
    %104 = vector.shape_cast %103 : vector<1xf32> to vector<1x1xf32>
    %105 = tpu.iota {dimensions = array<i32: 0>} : vector<8x128xi32>
    %106 = tpu.iota {dimensions = array<i32: 1>} : vector<8x128xi32>
    %cst_45 = arith.constant 0.000000e+00 : f32
    %107 = vector.broadcast %cst_45 : f32 to vector<8x128xf32>
    %c0_i32_46 = arith.constant 0 : i32
    %108 = vector.broadcast %c0_i32_46 : i32 to vector<8x128xi32>
    %109 = arith.cmpi eq, %105, %108 : vector<8x128xi32>
    %c0_i32_47 = arith.constant 0 : i32
    %110 = vector.broadcast %c0_i32_47 : i32 to vector<8x128xi32>
    %111 = arith.cmpi eq, %106, %110 : vector<8x128xi32>
    %112 = arith.andi %109, %111 : vector<8x128xi1>
    %113 = vector.shape_cast %88 : vector<1x1xf32> to vector<1x1xf32>
    %114 = vector.broadcast %113 : vector<1x1xf32> to vector<8x128xf32>
    %115 = arith.select %112, %114, %107 : vector<8x128xi1>, vector<8x128xf32>
    %c0_i32_48 = arith.constant 0 : i32
    %116 = vector.broadcast %c0_i32_48 : i32 to vector<8x128xi32>
    %117 = arith.cmpi eq, %105, %116 : vector<8x128xi32>
    %c1_i32_49 = arith.constant 1 : i32
    %118 = vector.broadcast %c1_i32_49 : i32 to vector<8x128xi32>
    %119 = arith.cmpi eq, %106, %118 : vector<8x128xi32>
    %120 = arith.andi %117, %119 : vector<8x128xi1>
    %121 = vector.shape_cast %94 : vector<1x1xf32> to vector<1x1xf32>
    %122 = vector.broadcast %121 : vector<1x1xf32> to vector<8x128xf32>
    %123 = arith.select %120, %122, %115 : vector<8x128xi1>, vector<8x128xf32>
    %c0_i32_50 = arith.constant 0 : i32
    %124 = vector.broadcast %c0_i32_50 : i32 to vector<8x128xi32>
    %125 = arith.cmpi eq, %105, %124 : vector<8x128xi32>
    %c2_i32 = arith.constant 2 : i32
    %126 = vector.broadcast %c2_i32 : i32 to vector<8x128xi32>
    %127 = arith.cmpi eq, %106, %126 : vector<8x128xi32>
    %128 = arith.andi %125, %127 : vector<8x128xi1>
    %129 = vector.shape_cast %99 : vector<1x1xf32> to vector<1x1xf32>
    %130 = vector.broadcast %129 : vector<1x1xf32> to vector<8x128xf32>
    %131 = arith.select %128, %130, %123 : vector<8x128xi1>, vector<8x128xf32>
    %c0_i32_51 = arith.constant 0 : i32
    %132 = vector.broadcast %c0_i32_51 : i32 to vector<8x128xi32>
    %133 = arith.cmpi eq, %105, %132 : vector<8x128xi32>
    %c3_i32 = arith.constant 3 : i32
    %134 = vector.broadcast %c3_i32 : i32 to vector<8x128xi32>
    %135 = arith.cmpi eq, %106, %134 : vector<8x128xi32>
    %136 = arith.andi %133, %135 : vector<8x128xi1>
    %137 = vector.shape_cast %104 : vector<1x1xf32> to vector<1x1xf32>
    %138 = vector.broadcast %137 : vector<1x1xf32> to vector<8x128xf32>
    %139 = arith.select %136, %138, %131 : vector<8x128xi1>, vector<8x128xf32>
    %c0_52 = arith.constant 0 : index
    %c0_53 = arith.constant 0 : index
    %140 = vector.load %arg6[%c0_52, %c0_53] : memref<8x128xf32, #tpu.memory_space<vmem>>, vector<8x128xf32>
    tpu.vector_store %arg6[%c0_52, %c0_53], %139 {strides = array<i32>} : memref<8x128xf32, #tpu.memory_space<vmem>>, vector<8x128xf32>,
    return
  }
  func.func @transform_0(%arg0: i32, %arg1: i32) -> (i32, i32, i32, i32) {
    %c1_i32 = arith.constant 1 : i32
    %c0_i32 = arith.constant 0 : i32
    %c0_i32_0 = arith.constant 0 : i32
    return %arg0, %c1_i32, %arg1, %c0_i32 : i32, i32, i32, i32
  }
  func.func @transform_1(%arg0: i32, %arg1: i32) -> (i32, i32, i32) {
    %c0_i32 = arith.constant 0 : i32
    %c0_i32_0 = arith.constant 0 : i32
    return %arg0, %arg1, %c0_i32 : i32, i32, i32
  }
  func.func @transform_2(%arg0: i32, %arg1: i32) -> (i32, i32, i32) {
    %c1_i32 = arith.constant 1 : i32
    %0 = arith.muli %arg1, %c1_i32 : i32
    %c1_i32_0 = arith.constant 1 : i32
    %1 = arith.subi %0, %c1_i32_0 : i32
    %c0_i32 = arith.constant 0 : i32
    %2 = arith.maxsi %1, %c0_i32 : i32
    %c0_i32_1 = arith.constant 0 : i32
    %c0_i32_2 = arith.constant 0 : i32
    return %arg0, %2, %c0_i32_1 : i32, i32, i32
  }
  func.func @transform_3(%arg0: i32, %arg1: i32) -> (i32, i32, i32) {
    %c1_i32 = arith.constant 1 : i32
    %0 = arith.addi %arg1, %c1_i32 : i32
    %c1_i32_0 = arith.constant 1 : i32
    %1 = arith.muli %0, %c1_i32_0 : i32
    %c1_i32_1 = arith.constant 1 : i32
    %2 = arith.minsi %1, %c1_i32_1 : i32
    %c0_i32 = arith.constant 0 : i32
    %c0_i32_2 = arith.constant 0 : i32
    return %arg0, %2, %c0_i32 : i32, i32, i32
  }
  func.func @transform_4(%arg0: i32, %arg1: i32) -> (i32, i32) {
    %c2_i32 = arith.constant 2 : i32
    %0 = arith.muli %arg0, %c2_i32 : i32
    %1 = arith.addi %0, %arg1 : i32
    %c0_i32 = arith.constant 0 : i32
    %c0_i32_0 = arith.constant 0 : i32
    return %1, %c0_i32 : i32, i32
  }
}

</mosaic_0001>

<bundles_post_ra>
// kernel: tpu_custom_call.1
= control target key start
LH: loop header
LB: loop body
LE: loop exit
PB: predicated region body
PF: predicated region fallthrough
CT: control target
= control target key end

     0   :  { %s1789_s0 = inlined_call_operand.hbm [shape: f32[2,4,16,16], index: 0, kind: input, shape index: {}]   ;;  %s1790_s1 = inlined_call_operand.hbm [shape: f32[2,16,16], index: 1, kind: input, shape index: {}]   ;;  %s1791_s2 = inlined_call_operand.hbm [shape: f32[2,16,16], index: 2, kind: input, shape index: {}]   ;;  %s1792_s3 = inlined_call_operand.hbm [shape: f32[2,16,16], index: 3, kind: input, shape index: {}]   ;;  %s1793_s4 = inlined_call_operand.hbm [shape: f32[32,128], index: 4, kind: output, shape index: {}]  }
   0x1   :  { %1817 = sst [smem:[#allocation30_spill]] %s1790_s1 }
   0x2   :  { %1818 = sst [smem:[#allocation31_spill]] %s1792_s3 }
   0x3   :  { %1819 = sst [smem:[#allocation32_spill]] %s1793_s4 }
   0x4   :  { %9 = vsyncpa [#allocation3], 0 }
   0x5   :  { %11 = vsyncpa [#allocation3 + $0x1], 0 }
   0x6   :  { %12 = vsyncpa [#allocation6], 0 }
   0x7   :  { %14 = vsyncpa [#allocation6 + $0x1], 0 }
   0x8   :  { %15 = vsyncpa [#allocation9], 0 }
   0x9   :  { %17 = vsyncpa [#allocation9 + $0x1], 0 }
   0xa   :  { %18 = vsyncpa [#allocation4], 0 }
   0xb   :  { %20 = vsyncpa [#allocation4 + $0x1], 0  ;;  %s1266_s15 = smov 0   ;;  %s1268_s16 = smov 0  }
   0xc   :  { %s1270_s17 = smov 0   ;;  %s1272_s18 = smov 0  }
   0xd   :  { %s1274_s19 = smov 0   ;;  %s1276_s20 = smov 0  }
   0xe   :  { %s1278_s21 = smov 0   ;;  %s1280_s22 = smov 0  }
   0xf   :  { %s1282_s23 = smov 0   ;;  %s1284_s24 = smov 0  }
  0x10   :  { %s1286_s25 = smov 0   ;;  %s1288_s26 = smov 0  }
  0x11   :  { %s1290_s27 = smov 0   ;;  %s1292_s28 = smov 0  }
  0x12   :  { %s1294_s29 = smov 0   ;;  %s1296_s30 = smov 0  }
  0x13   :  { %s1298_s5 = smov 0  }
  0x14 LB: > { %1820 = sst [smem:[#allocation16_spill]] %s1167_s15  ;;  %s1350_s6 = sadd.s32 4294967295, %s1231_s5   ;;  %s1231_s5 = sphi %s1298_s5, %s26_s5   ;;  %s1227_s30 = sphi %s1296_s30, %s1891_s30   ;;  %s1223_s29 = sphi %s1294_s29, %s1877_s29   ;;  %s1219_s28 = sphi %s1292_s28, %s1890_s28   ;;  %s1215_s27 = sphi %s1290_s27, %s1876_s27   ;;  %s1211_s26 = sphi %s1288_s26, %s1889_s26   ;;  %s1207_s25 = sphi %s1286_s25, %s1888_s25   ;;  %s1203_s24 = sphi %s1284_s24, %s1874_s24   ;;  %s1199_s23 = sphi %s1282_s23, %s1887_s23   ;;  %s1195_s22 = sphi %s1280_s22, %s1886_s22   ;;  %s1191_s21 = sphi %s1278_s21, %s1885_s21   ;;  %s1187_s20 = sphi %s1276_s20, %s1884_s20   ;;  %s1183_s19 = sphi %s1274_s19, %s1883_s19   ;;  %s1179_s18 = sphi %s1272_s18, %s1882_s18   ;;  %s1175_s17 = sphi %s1270_s17, %s1881_s17   ;;  %s1171_s16 = sphi %s1268_s16, %s1880_s16   ;;  %s1167_s15 = sphi %s1266_s15, %s1879_s15  }
  0x15   : > { %1821 = sst [smem:[#allocation17_spill]] %s1175_s17  ;;  %s35_s8 = sadd.s32 1, %s1223_s29 }
  0x16   : > { %1822 = sst [smem:[#allocation18_spill]] %s1179_s18  ;;  %s38_s9 = sadd.s32 1, %s1227_s30 }
  0x17   : > { %1823 = sst [smem:[#allocation19_spill]] %s1207_s25  ;;  %p36_p0 = scmp.ge.s32.totalorder %s35_s8, 2 }
  0x18   : > { %1824 = sst [smem:[#allocation20_spill]] %s1215_s27  ;;  %s47_s10 = sadd.s32 1, %s1211_s26 }
  0x19   : > { %1825 = sst [smem:[#allocation21_spill]] %s1219_s28  ;;  %p54_p1 = scmp.ne.s32.totalorder %s1211_s26, %s1207_s25 }
  0x1a   : > { %1826 = sst [smem:[#allocation22_spill]] %s1223_s29  ;;  %p1806_p2 = scmp.eq.s32.totalorder %s1231_s5, 0 }
  0x1b   : > { %s1893_s8 = smov (%p36_p0, %s35_s8), 0  ;;  %s1895_s9 = smov (!%p36_p0, %s38_s9), %s1227_s30 }
  0x1c   : > { %1827 = sst [smem:[#allocation23_spill]] %s1893_s8  ;;  %s43_s11 = ssub.s32 %s1223_s29, %s1893_s8 }
  0x1d   : > { %p1366_p3 = por %p1806_p2, %p54_p1  ;;  %p40_p4 = scmp.ge.s32.totalorder %s1895_s9, 2 }
  0x1e   : > { %p60_p5 = scmp.ne.s32.totalorder %s1207_s25, %s1203_s24  ;;  %p1805_p6 = scmp.eq.s32.totalorder %s1350_s6, 0 }
  0x1f   : > { %s722_s13 = sshll.u32 %s1227_s30, 1  ;;  %s1897_s9 = smov (%p40_p4, %s1895_s9), 0 }
  0x20   : > { %1829 = sst [smem:[#allocation24_spill]] %s1897_s9  ;;  %p1377_p7 = por %p1805_p6, %p60_p5 }
  0x21   : > { %s167_s7 = sadd.s32 %s1223_s29, %s722_s13  ;;  %s1384_s4 = ssub.s32 %s1227_s30, %s1897_s9 }
  0x22   : > { %s1830_s14 = scalar_select %p1377_p7, 1, 0 }
  0x23   : > { %s723_s24 = sshll.u32 %s1897_s9, 1  ;;  %s44_s28 = sor.u32 %s43_s11, %s1384_s4 }
  0x24   : > { %1831 = sst [smem:[#allocation25_spill]] %s1830_s14  ;;  %s169_s27 = sadd.s32 %s723_s24, %s1893_s8 }
  0x25   : > { %p45_p8 = scmp.eq.s32.totalorder %s44_s28, 0  ;;  %s170_s25 = ssub.s32 %s167_s7, %s169_s27 }
  0x26   : > { %p171_p9 = scmp.eq.s32.totalorder %s170_s25, 0  ;;  %s173_s3 = sadd.s32 1, %s1175_s17 }
  0x27   : > { %s1391_s18 = scalar_select %p45_p8, %s1211_s26, %s47_s10  }
  0x28   : > { %s1394_s14 = scalar_select %p171_p9, %s1175_s17, %s173_s3  }
  0x29   : > { %1832 = sst [smem:[#allocation26_spill]] %s1391_s18  ;;  %p183_p10 = scmp.ne.s32.totalorder %s1175_s17, %s1171_s16 }
  0x2a   : > { %1833 = sst [smem:[#allocation27_spill]] %s1394_s14  ;;  %p184_p11 = scmp.eq.s32.totalorder %s1350_s6, 3 }
  0x2b   : > { %p189_p12 = scmp.ne.s32.totalorder %s1171_s16, %s1167_s15  ;;  %s1834_s13 = sadd.s32 4294967294, %s1231_s5  }
  0x2c   : > { %p190_p13 = scmp.eq.s32.totalorder %s1834_s13, 3  ;;  %p1403_p0 = por %p184_p11, %p183_p10 }
  0x2d   : > { %p1804_p4 = scmp.lt.s32.totalorder %s1231_s5, 4  ;;  %s1802_s25 = sand.u32 1, %s1211_s26  }
  0x2e   : > { %s1835_s11 = scalar_select %p1403_p0, 1, 0 }
  0x2f   : > { %p1407_p1 = por %p190_p13, %p189_p12  ;;  %s231_s27 = sand.u32 1, %s1231_s5  }
  0x30   : > { %1836 = sst [smem:[#allocation28_spill]] %s1835_s11  ;;  %s1416_s3 = sshll.u32 %s1802_s25, 3 }
  0x31   : > { %s1837_s28 = scalar_select %p1407_p1, 1, 0 }
  0x32   : > { %p1422_p5 = pnand %p1804_p4, %p1366_p3  ;;  %s731_s24 = sshll.u32 %s167_s7, 7 }
  0x33   : > { %1838 = sst [smem:[#allocation29_spill]] %s1837_s28  ;;  %s235_s25 = scalar_lea.vmem [#allocation5], %s1416_s3 }
  0x34   : > { %s1840_s1 = sld [smem:[#allocation30_spill]]  ;;  %s244_s12 = sshll.u32 %s235_s25, 4  ;;  %s1432_s12 = int_to_ptr.vmem [resolvable:$true] %s244_s12 }
  0x35   : > { %s1435_s18 = scalar_lea.sflag [#allocation6], %s231_s27  ;;  %p926_p9 = pneg %p1422_p5 }
  0x3a   : > { %s1429_s8 = scalar_lea.hbm %s1840_s1, %s731_s24  ;;  %s929_s24 = scalar_lea.hbm %s1840_s1, 512 }
  0x3b   : > { %s924_s14 = scalar_lea.hbm %s1429_s8, 128  ;;  %p930_p12 = scmp.lt.u32.totalorder %s1429_s8, %s1840_s1 }
  0x3c   : > { %p925_p8 = scmp.ne.s32.totalorder %s1429_s8, %s924_s14  ;;  %p931_p13 = scmp.lt.u32.totalorder %s929_s24, %s924_s14 }
  0x3d   : > { %p933_p6 = scmp.lt.u32.totalorder %s924_s14, %s1429_s8 }
  0x3e   : > { %p927_p10 = pnand %p926_p9, %p925_p8  ;;  %p932_p4 = por %p931_p13, %p930_p12 }
  0x40   : > { %p928_p11 = pneg %p927_p10  ;;  %p934_p2 = por %p933_p6, %p932_p4 }
  0x42   : > { %p935_p3 = pnand %p934_p2, %p928_p11 }
  0x44   : > { %938 = shalt.err (!%p935_p3)
}
  0x45   : > { %s939_s25 = scalar_lea.vmem %s1432_s12, 128  ;;  %s1233_s27 = smov [#allocation5]  }
  0x46   : > { %p940_p8 = scmp.ne.s32.totalorder %s1432_s12, %s939_s25  ;;  %s944_s7 = sshll.u32 %s1233_s27, 4  ;;  %s945_s7 = int_to_ptr.vmem [resolvable:$false] %s944_s7 }
  0x47   : > { %s946_s17 = scalar_lea.vmem %s945_s7, 256  ;;  %p947_p0 = scmp.lt.s32.totalorder %s1432_s12, %s945_s7 }
  0x48   : > { %p942_p10 = pnand %p940_p8, %p926_p9  ;;  %p948_p12 = scmp.lt.s32.totalorder %s946_s17, %s939_s25 }
  0x4a   : > { %p943_p1 = pneg %p942_p10  ;;  %p949_p13 = por %p948_p12, %p947_p0 }
  0x4c   : > { %p950_p6 = pnand %p949_p13, %p943_p1 }
  0x4e   : > { %953 = shalt.err (!%p950_p6)
}
  0x4f   : > { %766 = dma.hbm_to_vmem [thread:$0]  (!%p1422_p5), %s1429_s8, 128, %s1432_s12, %s1435_s18  }
  0x50   : > { %p295_p2 = scmp.lt.s32.totalorder %s1231_s5, 5  ;;  %p1841_p4 = scmp.ge.s32.totalorder %s1231_s5, 1 }
  0x51   : > { %s727_s9 = sshll.u32 %s1227_s30, 3  ;;  %s214_s24 = scalar_lea.vmem [#allocation2], %s1416_s3 }
  0x52   : > { %p1466_p3 = pnand %p1841_p4, %p295_p2  ;;  %s224_s13 = sshll.u32 %s214_s24, 4  ;;  %s1473_s13 = int_to_ptr.vmem [resolvable:$true] %s224_s13 }
  0x53   : > { %s594_s25 = sadd.s32 %s1223_s29, %s727_s9  ;;  %s1843_s15 = sand.u32 1, %s1211_s26  }
  0x54   : > { %s728_s27 = sshll.u32 %s594_s25, 7  ;;  %s211_s8 = scalar_lea.sflag [#allocation3], %s1843_s15 }
  0x55   : > { %s596_s1 = scalar_lea.hbm %s1789_s0, %s728_s27  ;;  %s959_s9 = scalar_lea.hbm %s1789_s0, 2048 }
  0x56   : > { %s597_s28 = scalar_lea.hbm %s596_s1, 256  ;;  %s984_s12 = scalar_lea.hbm %s596_s1, 384 }
  0x57   : > { %p955_p0 = scmp.ne.s32.totalorder %s597_s28, %s984_s12  ;;  %p960_p8 = scmp.lt.u32.totalorder %s597_s28, %s1789_s0 }
  0x58   : > { %p961_p10 = scmp.lt.u32.totalorder %s959_s9, %s984_s12  ;;  %p963_p13 = scmp.lt.u32.totalorder %s984_s12, %s597_s28 }
  0x59   : > { %p957_p1 = pnand %p955_p0, %p926_p9 }
  0x5a   : > { %p962_p12 = por %p961_p10, %p960_p8 }
  0x5b   : > { %p958_p11 = pneg %p957_p1 }
  0x5c   : > { %p964_p6 = por %p963_p13, %p962_p12 }
  0x5e   : > { %p965_p2 = pnand %p964_p6, %p958_p11 }
  0x60   : > { %968 = shalt.err (!%p965_p2)
}
  0x61   : > { %s969_s1 = scalar_lea.vmem %s1473_s13, 128  ;;  %s1234_s15 = smov [#allocation2]  }
  0x62   : > { %p970_p4 = scmp.ne.s32.totalorder %s1473_s13, %s969_s1  ;;  %s974_s11 = sshll.u32 %s1234_s15, 4  ;;  %s975_s11 = int_to_ptr.vmem [resolvable:$false] %s974_s11 }
  0x63   : > { %s976_s29 = scalar_lea.vmem %s975_s11, 256  ;;  %p977_p7 = scmp.lt.s32.totalorder %s1473_s13, %s975_s11 }
  0x64   : > { %p972_p0 = pnand %p970_p4, %p926_p9  ;;  %p978_p8 = scmp.lt.s32.totalorder %s976_s29, %s969_s1 }
  0x66   : > { %p973_p1 = pneg %p972_p0  ;;  %p979_p10 = por %p978_p8, %p977_p7 }
  0x68   : > { %p980_p12 = pnand %p979_p10, %p973_p1 }
  0x6a   : > { %983 = shalt.err (!%p980_p12)
}
  0x6b   : > { %763 = dma.hbm_to_vmem [thread:$0]  (!%p1422_p5), %s597_s28, 128, %s1473_s13, %s211_s8  }
  0x6c   : > { %s109_s25 = sadd.s32 1, %s1199_s23  ;;  %p116_p7 = scmp.ne.s32.totalorder %s1199_s23, %s1195_s22 }
  0x6d   : > { %p122_p9 = scmp.ne.s32.totalorder %s1195_s22, %s1191_s21  ;;  %s253_s10 = sand.u32 1, %s1199_s23  }
  0x6e   : > { %p1844_p11 = scmp.eq.s32.totalorder %s1231_s5, 0  ;;  %p1814_p6 = scmp.eq.s32.totalorder %s1384_s4, 0 }
  0x6f   : > { %p1845_p2 = scmp.eq.s32.totalorder %s1350_s6, 0  ;;  %s732_s7 = sshll.u32 %s253_s10, 3 }
  0x70   : > { %p118_p13 = por %p116_p7, %p1844_p11  ;;  %s1161_s12 = sshll.u32 %s1227_s30, 8 }
  0x71   : > { %p1509_p4 = por %p122_p9, %p1845_p2  ;;  %s1524_s13 = scalar_lea.hbm %s1791_s2, %s1161_s12 }
  0x72   : > { %s1516_s17 = scalar_select %p1814_p6, %s1199_s23, %s109_s25  }
  0x73   : > { %s1846_s27 = scalar_select %p1509_p4, 1, 0 }
  0x74   : > { %s255_s21 = scalar_lea.vmem [#allocation7], %s732_s7  ;;  %p1847_p5 = scmp.lt.s32.totalorder %s1231_s5, 4 }
  0x75   : > { %s267_s8 = sshll.u32 %s255_s21, 4  ;;  %s985_s24 = scalar_lea.hbm %s1524_s13, 128  ;;  %s1526_s8 = int_to_ptr.vmem [resolvable:$true] %s267_s8 }
  0x76   : > { %p1530_p0 = pnand %p1847_p5, %p118_p13  ;;  %p986_p1 = scmp.ne.s32.totalorder %s1524_s13, %s985_s24 }
  0x77   : > { %s990_s11 = scalar_lea.hbm %s1791_s2, 512  ;;  %p991_p7 = scmp.lt.u32.totalorder %s1524_s13, %s1791_s2 }
  0x78   : > { %p987_p8 = pneg %p1530_p0  ;;  %p992_p9 = scmp.lt.u32.totalorder %s990_s11, %s985_s24 }
  0x79   : > { %p994_p13 = scmp.lt.u32.totalorder %s985_s24, %s1524_s13 }
  0x7a   : > { %p988_p10 = pnand %p987_p8, %p986_p1  ;;  %p993_p11 = por %p992_p9, %p991_p7 }
  0x7c   : > { %p989_p12 = pneg %p988_p10  ;;  %p995_p2 = por %p994_p13, %p993_p11 }
  0x7e   : > { %p996_p5 = pnand %p995_p2, %p989_p12 }
  0x80   : > { %999 = shalt.err (!%p996_p5)
}
  0x81   : > { %s1000_s10 = scalar_lea.vmem %s1526_s8, 128  ;;  %s1235_s7 = smov [#allocation7]  }
  0x82   : > { %p1001_p1 = scmp.ne.s32.totalorder %s1526_s8, %s1000_s10  ;;  %s1005_s3 = sshll.u32 %s1235_s7, 4  ;;  %s1006_s3 = int_to_ptr.vmem [resolvable:$false] %s1005_s3 }
  0x83   : > { %s1007_s28 = scalar_lea.vmem %s1006_s3, 256  ;;  %p1008_p4 = scmp.lt.s32.totalorder %s1526_s8, %s1006_s3 }
  0x84   : > { %p1003_p10 = pnand %p1001_p1, %p987_p8  ;;  %p1009_p7 = scmp.lt.s32.totalorder %s1007_s28, %s1000_s10 }
  0x86   : > { %p1004_p6 = pneg %p1003_p10  ;;  %p1010_p9 = por %p1009_p7, %p1008_p4 }
  0x88   : > { %p1011_p11 = pnand %p1010_p9, %p1004_p6 }
  0x8a   : > { %1014 = shalt.err (!%p1011_p11)
}
  0x8b   : > { %s1849_s21 = sld [smem:[#allocation18_spill]]  ;;  %s143_s24 = sadd.s32 1, %s1187_s20 }
  0x8c   : > { %769 = dma.hbm_to_vmem [thread:$0]  (!%p1530_p0), %s1524_s13, 128, %s1526_s8, %s1435_s18  }
  0x8d   : > { %p150_p6 = scmp.ne.s32.totalorder %s1187_s20, %s1183_s19  ;;  %s274_s9 = sand.u32 1, %s1187_s20  }
  0x8e   : > { %p1850_p8 = scmp.eq.s32.totalorder %s1231_s5, 0  ;;  %p1851_p13 = scmp.eq.s32.totalorder %s1350_s6, 0 }
  0x8f   : > { %s736_s15 = sshll.u32 %s274_s9, 3  ;;  %p1853_p5 = scmp.eq.s32.totalorder %s1384_s4, 0 }
  0x90   : > { %p152_p12 = por %p150_p6, %p1850_p8  ;;  %s278_s11 = scalar_lea.vmem [#allocation8], %s736_s15 }
  0x91   : > { %p156_p4 = scmp.ne.s32.totalorder %s1183_s19, %s1849_s21  ;;  %s290_s29 = sshll.u32 %s278_s11, 4  ;;  %s1581_s29 = int_to_ptr.vmem [resolvable:$true] %s290_s29 }
  0x92   : > { %s1577_s25 = scalar_select %p1853_p5, %s1187_s20, %s143_s24  }
  0x93   : > { %p1570_p2 = por %p156_p4, %p1851_p13  ;;  %s1163_s10 = sadd.s32 128, %s1161_s12 }
  0x94   : > { %s1854_s8 = sld [smem:[#allocation31_spill]]  ;;  %p1855_p0 = scmp.lt.s32.totalorder %s1231_s5, 4 }
  0x95   : > { %s1852_s1 = scalar_select %p1570_p2, 1, 0 }
  0x96   : > { %p1590_p1 = pnand %p1855_p0, %p152_p12  ;;  %s275_s4 = scalar_lea.sflag [#allocation9], %s274_s9 }
  0x98   : > { %p1017_p7 = pneg %p1590_p1 }
  0x9a   : > { %s1586_s7 = scalar_lea.hbm %s1854_s8, %s1163_s10  ;;  %s1020_s24 = scalar_lea.hbm %s1854_s8, 512 }
  0x9b   : > { %s1015_s12 = scalar_lea.hbm %s1586_s7, 128  ;;  %p1021_p6 = scmp.lt.u32.totalorder %s1586_s7, %s1854_s8 }
  0x9c   : > { %p1016_p10 = scmp.ne.s32.totalorder %s1586_s7, %s1015_s12  ;;  %p1022_p4 = scmp.lt.u32.totalorder %s1020_s24, %s1015_s12 }
  0x9d   : > { %p1024_p12 = scmp.lt.u32.totalorder %s1015_s12, %s1586_s7 }
  0x9e   : > { %p1018_p9 = pnand %p1017_p7, %p1016_p10  ;;  %p1023_p8 = por %p1022_p4, %p1021_p6 }
  0xa0   : > { %p1019_p11 = pneg %p1018_p9  ;;  %p1025_p13 = por %p1024_p12, %p1023_p8 }
  0xa2   : > { %p1026_p5 = pnand %p1025_p13, %p1019_p11 }
  0xa4   : > { %1029 = shalt.err (!%p1026_p5)
}
  0xa5   : > { %s1030_s9 = scalar_lea.vmem %s1581_s29, 128  ;;  %s1236_s10 = smov [#allocation8]  }
  0xa6   : > { %p1031_p0 = scmp.ne.s32.totalorder %s1581_s29, %s1030_s9  ;;  %s1035_s18 = sshll.u32 %s1236_s10, 4  ;;  %s1036_s18 = int_to_ptr.vmem [resolvable:$false] %s1035_s18 }
  0xa7   : > { %s1037_s13 = scalar_lea.vmem %s1036_s18, 256  ;;  %p1038_p2 = scmp.lt.s32.totalorder %s1581_s29, %s1036_s18 }
  0xa8   : > { %p1033_p10 = pnand %p1031_p0, %p1017_p7  ;;  %p1039_p6 = scmp.lt.s32.totalorder %s1037_s13, %s1030_s9 }
  0xaa   : > { %p1034_p9 = pneg %p1033_p10  ;;  %p1040_p4 = por %p1039_p6, %p1038_p2 }
  0xac   : > { %p1041_p8 = pnand %p1040_p4, %p1034_p9 }
  0xae   : > { %1044 = shalt.err (!%p1041_p8)
}
  0xaf   : > { %772 = dma.hbm_to_vmem [thread:$0]  (!%p1590_p1), %s1586_s7, 128, %s1581_s29, %s275_s4  }
  0xb0   : > { %299 = sbr.rel (%p1466_p3) target bundleno = 769 (0x301), region = 36  ;;  %s1857_s12 = sld [smem:[#allocation19_spill]] (!%p1466_p3) }
  0xb1   : > { %s1858_s28 = sld [smem:[#allocation25_spill]] (!%p1466_p3) }
  0xb6   : > { %s301_s21 = sand.u32 (!%p1466_p3), 1, %s1857_s12  }
  0xb7   : > { %s1622_s24 = sshll.u32 %s301_s21, 3  ;;  %s302_s15 = scalar_lea.sflag [#allocation3], %s301_s21 }
  0xb8   : > { %s305_s11 = scalar_lea.vmem [#allocation2], %s1622_s24  ;;  %p1859_p7 = scmp.ne.s32.totalorder %s1858_s28, 0 }
  0xba   : > { %1142 = dma.done.wait (%p1859_p7), %s302_s15, 128  }
  0xbb   : > { %1144 = vsyncadd (%p1859_p7), %s302_s15, 4294967168  ;;  %s310_s29 = sand.u32 1, %s1350_s6   ;;  %s314_s14 = scalar_lea.vmem [#allocation5], %s1622_s24 }
  0xbc   : > { %s311_s7 = scalar_lea.sflag [#allocation6], %s310_s29 }
  0xbd   : > { %1146 = dma.done.wait (%p1859_p7), %s311_s7, 128  }
  0xbe   : > { %1148 = vsyncadd (%p1859_p7), %s311_s7, 4294967168  ;;  %s321_s3 = sand.u32 1, %s1195_s22   ;;  %p1860_p3 = scmp.ne.s32.totalorder %s1846_s27, 0 }
  0xbf   : > { %s742_s4 = sshll.u32 %s321_s3, 3 }
  0xc0   : > { %s323_s9 = scalar_lea.vmem [#allocation7], %s742_s4 }
  0xc1   : > { %1150 = dma.done.wait (%p1860_p3), %s311_s7, 128  }
  0xc2   : > { %1152 = vsyncadd (%p1860_p3), %s311_s7, 4294967168  ;;  %s328_s6 = sand.u32 1, %s1183_s19   ;;  %p1861_p2 = scmp.ne.s32.totalorder %s1852_s1, 0 }
  0xc3   : > { %s743_s10 = sshll.u32 %s328_s6, 3  ;;  %s329_s18 = scalar_lea.sflag [#allocation9], %s328_s6 }
  0xc4   : > { %s332_s13 = scalar_lea.vmem [#allocation8], %s743_s10 }
  0xc5   : > { %1154 = dma.done.wait (%p1861_p2), %s329_s18, 128  }
  0xc6   : > { %1156 = vsyncadd (%p1861_p2), %s329_s18, 4294967168  ;;  %s1862_s12 = sld [smem:[#allocation20_spill]]  ;;  %v419_v0 = vlaneseq  ;;  %v381_v5 = vld [vmem:[%s314_s14] sm:$0xff]  ;;  %v383_v6 = vld [vmem:[%s323_s9 + $0x7] sm:$0x1]  ;;  %s1237_s1 = smov 16  }
  0xc7   : > { %v389_v7 = vld [vmem:[%s332_s13] sm:$0x1]  ;;  %v427_v10 = vrot.slane %v381_v5, 7  ;;  %v433_v11 = vrot.slane %v381_v5, 1  ;;  %v439_v14 = vmul.f32 2.0, %v381_v5  ;;  %vm443_vm4 = vcmask 1047680  }
  0xc8   : > { %v1648_v1 = vshrl.u32 %v419_v0, 7  ;;  %v380_v24 = vld [vmem:[%s305_s11] sm:$0xff]  ;;  %s1238_s21 = smov 113   ;;  %v415_v46 = vsub.f32 1.0, %v381_v5  ;;  %s1239_s24 = smov 127   ;;  %vm489_vm6 = vcmask 130048  }
  0xc9   : > { %v394_v25 = vand.u32 2147483647, %v380_v24  ;;  %v410_v36 = vmax.f32 %v380_v24, 0.0  ;;  %v407_v39 = vmin.f32 %v380_v24, 0.0  ;;  %v1669_v61 = vand.u32 127, %v419_v0  ;;  %s1863_s15 = sld [smem:[#allocation21_spill]] }
  0xca   : > { %v430_v4 = vsub.s32 0, %v1648_v1  ;;  %vm423_vm2 = vcmp.eq.s32.totalorder %v1648_v1, 0  ;;  %vm424_vm3 = vcmp.eq.s32.totalorder %v1648_v1, 7  ;;  %s369_s11 = sand.u32 1, %s1171_s16   ;;  %s1864_s4 = sld [smem:[#allocation28_spill]] }
  0xcb   : > { %v395_v26 = vsub.f32 0.0, %v394_v25  ;;  %v411_v40 = vsub.f32 0.0, %v410_v36  ;;  %vm425_vm7 = vcmp.eq.s32.totalorder %v1669_v61, 0  ;;  %vm426_vm8 = vcmp.eq.s32.totalorder %v1669_v61, 15  ;;  %s744_s29 = sshll.u32 %s369_s11, 3  ;;  %s1865_s13 = sld [smem:[#allocation32_spill]] }
  0xcc   : > { %p382_p1 = scmp.gt.s32.totalorder %s1862_s12, 0  ;;  %p388_p11 = scmp.lt.s32.totalorder %s1862_s12, 1  ;;  %vm534_vm11 = vcmp.eq.s32.totalorder %v1669_v61, 1  ;;  %vm537_vm12 = vcmp.eq.s32.totalorder %v1669_v61, 2  ;;  %vm532_vm13 = vmand %vm423_vm2, %vm425_vm7  ;;  %vm540_vm14 = vcmp.eq.s32.totalorder %v1669_v61, 3 }
  0xcd   : > { %v396_v27 = vmul.f32 1.442695, %v395_v26  ;;  %vm535_vm15 = vmand %vm423_vm2, %vm534_vm11  ;;  %s371_s9 = scalar_lea.vmem [#allocation10], %s744_s29 }
  0xce   : > { %s384_s28 = scalar_select %p382_p1, 1, 0 }
  0xcf   : > { %s390_s27 = scalar_select %p388_p11, 1, 0  ;;  %918 = vpow2.f32 %v396_v27 }
  0xd0   : > { %v385_v2 = vstv %s384_s28  ;;  %s746_s7 = sshll.u32 %s1863_s15, 1  ;;  %s560_s6 = sshll.u32 %s371_s9, 4  ;;  %s1705_s6 = int_to_ptr.vmem [resolvable:$true] %s560_s6 }
  0xd1   : > { %vm386_vm0 = vcmp.eq.s32.totalorder %v385_v2, 1  ;;  %v391_v3 = vstv %s390_s27  ;;  %s553_s14 = sadd.s32 %s1862_s12, %s746_s7  ;;  %s545_s28 = scalar_lea.sflag [#allocation4], %s369_s11 }
  0xd2   : > { %vm392_vm1 = vcmp.eq.s32.totalorder %v391_v3, 1  ;;  %v387_v8 = vsel %vm386_vm0, %v383_v6, 0.0  ;;  %vm538_vm0 = vmand %vm423_vm2, %vm537_vm12  ;;  %s747_s3 = sshll.u32 %s553_s14, 7  ;;  %s1045_s27 = scalar_lea.vmem %s1705_s6, 128 }
  0xd3   : > { %v393_v9 = vsel %vm392_vm1, %v389_v7, 0.0  ;;  %v431_v12 = vrot.slane %v387_v8, %v430_v4  ;;  %vm541_vm1 = vmand %vm423_vm2, %vm540_vm14  ;;  %s1703_s12 = scalar_lea.hbm %s1865_s13, %s747_s3  ;;  %p1046_p12 = scmp.ne.s32.totalorder %s1705_s6, %s1045_s27 }
  0xd4   : > { %v437_v13 = vrot.slane %v393_v9, %v430_v4  ;;  %p1866_p13 = scmp.ne.s32.totalorder %s1864_s4, 0 }
  0xd5   : > { %v432_v15 = vsel %vm423_vm2, %v431_v12, %v427_v10 }
  0xd6   : > { %v438_v16 = vsel %vm424_vm3, %v437_v13, %v433_v11  ;;  %v440_v18 = vadd.f32 %v439_v14, %v432_v15  ;;  %p1047_p5 = pnand %p1046_p12, %p1866_p13 }
  0xd7   : > { %v1655_v17 = vsub.f32 %v438_v16, %v432_v15 }
  0xd8   : > { %v441_v19 = vadd.f32 %v440_v18, %v438_v16  ;;  %p1048_p0 = pneg %p1047_p5 }
  0xd9   : > { %460 = vrot.lane.b32.xlu0 %v1655_v17, %s1237_s1  ;;  %v919_v28 = vpop.eup %918  ;;  %v471_v63 = vmul.f32 2.0, %v1655_v17 }
  0xda   : > { %v398_v29 = vadd.f32 1.0, %v919_v28  ;;  %v401_v30 = vmul.f32 -0.5, %v919_v28  ;;  %v404_v35 = vand.u32 2147483647, %v919_v28 }
  0xdc   : > { %920 = vlog2.f32 %v398_v29  ;;  %v402_v32 = vadd.f32 1.0, %v401_v30  ;;  %vm405_vm5 = vcmp.lt.f32.partialorder %v404_v35, 0.0004427343 }
  0xdd   : > { %444 = vrot.lane.b32.xlu0 %v441_v19, %s1237_s1 }
  0xde   : > { %v403_v38 = vmul.f32 %v919_v28, %v402_v32 }
  0xe6   : > { %v921_v33 = vpop.eup %920 }
  0xe7   : > { %v400_v37 = vmul.f32 0.6931472, %v921_v33 }
  0xe9   : > { %v406_v42 = vsel %vm405_vm5, %v403_v38, %v400_v37 }
  0xea   : > { %v408_v44 = vsub.f32 %v407_v39, %v406_v42  ;;  %v412_v45 = vsub.f32 %v411_v40, %v406_v42 }
  0xec   : > { %v409_v47 = vmax.f32 %v408_v44, -100.0  ;;  %v413_v48 = vmax.f32 %v412_v45, -100.0 }
  0xee   : > { %v414_v49 = vmul.f32 %v409_v47, %v381_v5  ;;  %v416_v50 = vmul.f32 %v415_v46, %v413_v48 }
  0xf0   : > { %v417_v51 = vadd.f32 %v416_v50, %v414_v49 }
  0xf2   : > { %v418_v52 = vsub.f32 0.0, %v417_v51 }
  0xf4   : > { %v490_v53 = vsel %vm489_vm6, %v418_v52, 0.0 }
  0xf5   : > { %v491_v54 = vrot.slane %v490_v53, 4 }
  0xf7   : > { %v492_v55 = vadd.f32 %v491_v54, %v490_v53 }
  0xf9   : > { %v493_v56 = vrot.slane %v492_v55, 2 }
  0xfb   : > { %v494_v57 = vadd.f32 %v493_v56, %v492_v55 }
  0xfd   : > { %v495_v58 = vrot.slane %v494_v57, 1 }
  0xff   : > { %v496_v59 = vadd.f32 %v495_v58, %v494_v57 }
 0x101   : > { %v497_v60 = vsel %vm489_vm6, %v496_v59, 0.0 }
 0x14b   : > { %v461_v20 = vpop.permute.xlu0 %460 }
 0x14c   : > { %v462_v21 = vsel %vm443_vm4, %v461_v20, %v1655_v17 }
 0x14d   : > { %463 = vrot.lane.b32.xlu1 %v462_v21, %s1237_s1 }
 0x14f   : > { %v445_v22 = vpop.permute.xlu0 %444 }
 0x150   : > { %v446_v23 = vsel %vm443_vm4, %v445_v22, %v441_v19 }
 0x151   : > { %447 = vrot.lane.b32.xlu1 %v446_v23, %s1237_s1  ;;  %s1240_s1 = smov [#allocation10]  }
 0x1bf   : > { %v464_v31 = vpop.permute.xlu1 %463 }
 0x1c0   : > { %v465_v34 = vsel %vm443_vm4, %v464_v31, %v1655_v17 }
 0x1c1   : > { %467 = vrot.lane.b32.xlu0 %v465_v34, %s1238_s21 }
 0x1c3   : > { %v448_v41 = vpop.permute.xlu1 %447 }
 0x1c4   : > { %v449_v43 = vsel %vm443_vm4, %v448_v41, %v441_v19 }
 0x1c5   : > { %455 = vrot.lane.b32.xlu0 %v449_v43, %s1238_s21  ;;  %451 = vrot.lane.b32.xlu1 %v449_v43, %s1239_s24  ;;  %s1049_s21 = sshll.u32 %s1240_s1, 4  ;;  %s1050_s21 = int_to_ptr.vmem [resolvable:$false] %s1049_s21 }
 0x1c6   : > { %p1052_p10 = scmp.lt.s32.totalorder %s1705_s6, %s1050_s21 }
 0x1c9   : > { %473 = vrot.lane.b32.xlu1 %v465_v34, %s1239_s24  ;;  %s1051_s24 = scalar_lea.vmem %s1050_s21, 256 }
 0x1ca   : > { %p1053_p9 = scmp.lt.s32.totalorder %s1051_s24, %s1045_s27 }
 0x1cc   : > { %p1054_p6 = por %p1053_p9, %p1052_p10 }
 0x1ce   : > { %p1055_p4 = pnand %p1054_p6, %p1048_p0 }
 0x1e4   : > { %498 = vadd.xlane.f32.xlu0 %v497_v60 }
 0x233   : > { %v468_v62 = vpop.permute.xlu0 %467 }
 0x234   : > { %v470_v4 = vsel %vm425_vm7, 0.0, %v468_v62 }
 0x235   : > { %v472_v7 = vadd.f32 %v471_v63, %v470_v4 }
 0x237   : > { %v452_v2 = vpop.permute.xlu1 %451  ;;  %v456_v3 = vpop.permute.xlu0 %455 }
 0x238   : > { %v454_v5 = vsel %vm426_vm8, 0.0, %v452_v2  ;;  %v458_v6 = vsel %vm425_vm7, 0.0, %v456_v3 }
 0x239   : > { %v459_v8 = vsub.f32 %v454_v5, %v458_v6 }
 0x23b   : > { %v474_v0 = vpop.permute.xlu1 %473  ;;  %v478_v11 = vmul.f32 %v459_v8, %v459_v8 }
 0x23c   : > { %v476_v9 = vsel %vm426_vm8, 0.0, %v474_v0 }
 0x23d   : > { %v477_v10 = vadd.f32 %v476_v9, %v472_v7 }
 0x23f   : > { %v479_v12 = vmul.f32 %v477_v10, %v477_v10 }
 0x241   : > { %v480_v13 = vadd.f32 %v479_v12, %v478_v11 }
 0x243   : > { %922 = vrsqrt.f32 %v480_v13  ;;  %vm483_vm9 = vcmp.eq.f32.partialorder %v480_v13, inf  ;;  %v486_v16 = vand.u32 2147483648, %v480_v13  ;;  %vm485_vm10 = vcmp.eq.f32.partialorder %v480_v13, 0.0 }
 0x24d   : > { %v923_v14 = vpop.eup %922 }
 0x24e   : > { %v482_v15 = vmul.f32 %v923_v14, %v480_v13 }
 0x250   : > { %v484_v17 = vsel %vm483_vm9, %v480_v13, %v482_v15 }
 0x251   : > { %v487_v18 = vsel %vm485_vm10, %v486_v16, %v484_v17 }
 0x252   : > { %v512_v19 = vsel %vm489_vm6, %v487_v18, inf  ;;  %v500_v20 = vmul.f32 %v487_v18, %v418_v52  ;;  %v522_v21 = vsel %vm489_vm6, %v487_v18, -inf }
 0x253   : > { %v513_v22 = vrot.slane %v512_v19, 4  ;;  %v523_v23 = vrot.slane %v522_v21, 4 }
 0x254   : > { %v502_v24 = vsel %vm489_vm6, %v500_v20, 0.0 }
 0x255   : > { %v514_v25 = vmin.f32 %v512_v19, %v513_v22  ;;  %v503_v26 = vrot.slane %v502_v24, 4  ;;  %v524_v27 = vmax.f32 %v522_v21, %v523_v23 }
 0x257   : > { %v515_v28 = vrot.slane %v514_v25, 2  ;;  %v504_v29 = vadd.f32 %v503_v26, %v502_v24  ;;  %v525_v30 = vrot.slane %v524_v27, 2 }
 0x259   : > { %v516_v31 = vmin.f32 %v514_v25, %v515_v28  ;;  %v505_v32 = vrot.slane %v504_v29, 2  ;;  %v526_v33 = vmax.f32 %v524_v27, %v525_v30 }
 0x25b   : > { %v517_v34 = vrot.slane %v516_v31, 1  ;;  %v506_v35 = vadd.f32 %v505_v32, %v504_v29  ;;  %v527_v36 = vrot.slane %v526_v33, 1 }
 0x25d   : > { %v518_v37 = vmin.f32 %v516_v31, %v517_v34  ;;  %v507_v38 = vrot.slane %v506_v35, 1  ;;  %v528_v41 = vmax.f32 %v526_v33, %v527_v36 }
 0x25f   : > { %v519_v39 = vsel %vm489_vm6, %v518_v37, inf  ;;  %v508_v40 = vadd.f32 %v507_v38, %v506_v35  ;;  %v529_v43 = vsel %vm489_vm6, %v528_v41, -inf }
 0x260   : > { %520 = vmin.xlane.f32.xlu0 %v519_v39 }
 0x261   : > { %v509_v42 = vsel %vm489_vm6, %v508_v40, 0.0 }
 0x262   : > { %510 = vadd.xlane.f32.xlu1 %v509_v42 }
 0x264   : > { %530 = vmax.xlane.f32.xlu0 %v529_v43 }
 0x271   : > { %v499_v44 = vpop.xlane.xlu0 %498 }
 0x272   : > { %v533_v46 = vsel %vm532_vm13, %v499_v44, 0.0 }
 0x2ed   : > { %v521_v45 = vpop.xlane.xlu0 %520 }
 0x2ef   : > { %v511_v47 = vpop.xlane.xlu1 %510 }
 0x2f0   : > { %v536_v48 = vsel %vm535_vm15, %v511_v47, %v533_v46 }
 0x2f1   : > { %v539_v49 = vsel %vm538_vm0, %v521_v45, %v536_v48  ;;  %v531_v50 = vpop.xlane.xlu0 %530 }
 0x2f2   : > { %v542_v51 = vsel %vm541_vm1, %v531_v50, %v539_v49 }
 0x2f3   : > { %543 = vst [vmem:[%s371_s9] sm:$0xff] %v542_v51 }
 0x2f4   : > { %1058 = shalt.err (!%p1055_p4)
}
 0x2f5   : > { %s1059_s15 = scalar_lea.hbm %s1703_s12, 128  ;;  %s1063_s7 = scalar_lea.hbm %s1865_s13, 512 }
 0x2f6   : > { %p1060_p8 = scmp.ne.s32.totalorder %s1703_s12, %s1059_s15  ;;  %p1064_p2 = scmp.lt.u32.totalorder %s1703_s12, %s1865_s13 }
 0x2f7   : > { %p1065_p1 = scmp.lt.u32.totalorder %s1063_s7, %s1059_s15  ;;  %p1067_p12 = scmp.lt.u32.totalorder %s1059_s15, %s1703_s12 }
 0x2f8   : > { %p1061_p7 = pnand %p1060_p8, %p1866_p13 }
 0x2f9   : > { %p1066_p11 = por %p1065_p1, %p1064_p2 }
 0x2fa   : > { %p1062_p3 = pneg %p1061_p7 }
 0x2fb   : > { %p1068_p5 = por %p1067_p12, %p1066_p11 }
 0x2fd   : > { %p1069_p0 = pnand %p1068_p5, %p1062_p3 }
 0x2ff   : > { %1072 = shalt.err (!%p1069_p0)
}
 0x300   : > { %758 = dma.vmem_to_hbm [thread:$0]  (%p1866_p13), %s1705_s6, 128, %s1703_s12, %s545_s28  }
 0x301 PF: > { %s1867_s9 = sld [smem:[#allocation16_spill]]  ;;  %s1868_s10 = sld [smem:[#allocation29_spill]] }
 0x302   : > { %p778_p10 = scmp.ge.s32.totalorder %s1231_s5, 2 }
 0x307   : > { %s572_s18 = sand.u32 1, %s1867_s9   ;;  %p1869_p9 = scmp.ne.s32.totalorder %s1868_s10, 0 }
 0x308   : > { %s573_s27 = scalar_lea.sflag [#allocation4], %s572_s18 }
 0x309   : > { %p774_p6 = pnand %p778_p10, %p1869_p9 }
 0x30b   : > { %1158 = dma.done.wait (!%p774_p6), %s573_s27, 128  }
 0x30c   : > { %1160 = vsyncadd (!%p774_p6), %s573_s27, 4294967168  ;;  %s26_s5 = sadd.s32 1, %s1231_s5   ;;  %s1871_s4 = sld [smem:[#allocation17_spill]] }
 0x30d   : > { %p1733_p4 = scmp.ge.s32.totalorder %s26_s5, 6   ;;  %s1872_s6 = sld [smem:[#allocation27_spill]] }
 0x30e   : > { %s1873_s12 = smov %s1516_s17  ;;  %s1874_s24 = sld [smem:[#allocation19_spill]] }
 0x30f   : > { %s1875_s28 = sld [smem:[#allocation26_spill]]  ;;  %s1876_s27 = sld [smem:[#allocation22_spill]] }
 0x310   : > { %s1877_s29 = sld [smem:[#allocation23_spill]]  ;;  %s1878_s11 = sld [smem:[#allocation24_spill]] }
 0x311   : > { %s1879_s15 = smov %s1171_s16  ;;  %s1882_s18 = smov %s1183_s19 }
 0x312   : > { %s1880_s16 = smov %s1871_s4  ;;  %s1883_s19 = smov %s1187_s20 }
 0x313   : > { %s1881_s17 = smov %s1872_s6  ;;  %s1884_s20 = smov %s1577_s25 }
 0x314   : > { %s1885_s21 = smov %s1195_s22  ;;  %s1886_s22 = smov %s1199_s23 }
 0x315   : > { %s1887_s23 = smov %s1873_s12  ;;  %s1888_s25 = smov %s1211_s26 }
 0x316   : > { %s1889_s26 = smov %s1875_s28  ;;  %s1890_s28 = smov %s1227_s30 }
 0x317   : > { %s1891_s30 = smov %s1878_s11  ;;  %25 = sbr.rel (!%p1733_p4) target bundleno = 20 (0x14), region = 118 }
 0x31e   :  { %578 = vsyncpa [#allocation3], 1 }
 0x31f   :  { %580 = vsyncpa [#allocation3 + $0x1], 1 }
 0x320   :  { %581 = vsyncpa [#allocation6], 1 }
 0x321   :  { %583 = vsyncpa [#allocation6 + $0x1], 1 }
 0x322   :  { %584 = vsyncpa [#allocation9], 1 }
 0x323   :  { %586 = vsyncpa [#allocation9 + $0x1], 1 }
 0x324   :  { %587 = vsyncpa [#allocation4], 1 }
 0x325   :  { %589 = vsyncpa [#allocation4 + $0x1], 1 }

</bundles_post_ra>
